<compile_context>
chip_gen: v5e
topology: v5e:2x2
jax: 0.10.0
libtpu: 0.0.40
codegen_flags: <defaults>
</compile_context>

<pallas_src>
import functools

import jax
import jax.numpy as jnp
from jax.experimental import pallas as pl
from jax.experimental.pallas import tpu as pltpu  # noqa: F401  (VMEM/SMEM for the TODO'd grid version)

LANE = 128      # vreg lane width   -> last-dim padding target
SUBLANE = 8     # vreg sublane width -> second-to-last padding target
NEG_INF = -1e30


def _round_up(x, m):
    return (x + m - 1) // m * m


def _full_spec(shape):
    # whole (padded) array as one VMEM-resident block; no grid.
    return pl.BlockSpec(shape, lambda: (0, 0))


# ----------------------------------------------------------------------------
# Fused Pallas kernel:
#   h = relu( (A0 @ X) * (1/deg0) @ W1 + b1 )        (dropout is eval-mode identity)
#   z = (A1 @ h) * (1/deg1) @ W2 + b2                (b2 carries the class-lane mask)
#   out = log_softmax(z)
# ----------------------------------------------------------------------------
def _sagenet_kernel(a0_ref, x_ref, w1_ref, b1_ref, a1_ref, w2_ref, b2_ref, o_ref):
    # ---- layer 0 ----
    a0 = a0_ref[...]                                   # exact 0/1 edge counts (f32)
    deg0 = jnp.sum(a0, axis=1, keepdims=True)          # XLU row reduce; exact integers
    agg0 = jnp.dot(a0, x_ref[...], preferred_element_type=jnp.float32)
    agg0 = agg0 * (1.0 / jnp.maximum(deg0, 1.0))       # f32 per-row mean scale
    h = jnp.dot(agg0, w1_ref[...], preferred_element_type=jnp.float32)
    h = jnp.maximum(h + b1_ref[...], 0.0)
    # h stays in vregs -- no VMEM scratch round trip -- and feeds layer 1 directly.

    # ---- layer 1 ----
    a1 = a1_ref[...]
    deg1 = jnp.sum(a1, axis=1, keepdims=True)
    agg1 = jnp.dot(a1, h, preferred_element_type=jnp.float32)
    agg1 = agg1 * (1.0 / jnp.maximum(deg1, 1.0))
    z = jnp.dot(agg1, w2_ref[...], preferred_element_type=jnp.float32)
    z = z + b2_ref[...]            # padded class lanes get -1e30 for free here

    # ---- log-softmax (padded lanes already at -1e30 -> exp() == 0) ----
    m = jnp.max(z, axis=1, keepdims=True)
    lse = jnp.log(jnp.sum(jnp.exp(z - m), axis=1, keepdims=True)) + m
    o_ref[...] = z - lse


def _fused_sagenet(a0p, xp, w1p, b1p, a1p, w2p, b2p):
    p_dst = a1p.shape[0]
    c_out_p = w2p.shape[1]
    operands = (a0p, xp, w1p, b1p, a1p, w2p, b2p)
    return pl.pallas_call(
        _sagenet_kernel,
        out_shape=jax.ShapeDtypeStruct((p_dst, c_out_p), jnp.float32),
        # No grid: all padded blocks (well under 1 MiB total) are VMEM-resident.
        in_specs=[_full_spec(op.shape) for op in operands],
        out_specs=pl.BlockSpec((p_dst, c_out_p), lambda: (0, 0)),
    )(*operands)


# ----------------------------------------------------------------------------
# Host-side (one-time) parameter padding + per-forward glue
# ----------------------------------------------------------------------------
def prepare_params(params, in_channels, hidden, n_classes):
    """Pad weights/biases once at init; done outside the per-forward path."""
    c_in_p = _round_up(in_channels, LANE)
    c_hid_p = _round_up(hidden, LANE)
    c_out_p = _round_up(n_classes, LANE)
    W1p = jnp.zeros((c_in_p, c_hid_p), jnp.float32).at[:in_channels, :hidden].set(params["W1"])
    b1p = jnp.zeros((1, c_hid_p), jnp.float32).at[0, :hidden].set(params["b1"])
    W2p = jnp.zeros((c_hid_p, c_out_p), jnp.float32).at[:hidden, :n_classes].set(params["W2"])
    # Fold the class-lane mask into the padded bias: padded logits come out at
    # -1e30 through the existing bias add, so the kernel needs no iota/where.
    b2p = jnp.full((1, c_out_p), NEG_INF, jnp.float32).at[0, :n_classes].set(params["b2"])
    return {"W1p": W1p, "b1p": b1p, "W2p": W2p, "b2p": b2p,
            "n_classes": n_classes, "in_channels": in_channels, "hidden": hidden}


def pad_features(x_all, in_channels):
    """Pad node-feature channels to a lane multiple once at init."""
    c_in_p = _round_up(in_channels, LANE)
    return jnp.pad(x_all, ((0, 0), (0, c_in_p - in_channels)))


def build_adj_counts(edge_index, p_dst, p_src):
    """Dense 0/1(+multiplicity) edge-count matrix, built directly at padded shape."""
    src = edge_index[0]
    dst = edge_index[1]
    return jnp.zeros((p_dst, p_src), jnp.float32).at[dst, src].add(1.0)


@functools.partial(jax.jit,
                   static_argnames=("n_src0", "n_dst0", "n_dst1", "n_classes"))
def _sagenet_impl(x_all_p, n_id0, ei0, ei1, w1p, b1p, w2p, b2p, *,
                  n_src0, n_dst0, n_dst1, n_classes):
    p_src = _round_up(n_src0, LANE)
    p_mid = _round_up(n_dst0, LANE)
    p_dst = _round_up(n_dst1, SUBLANE)
    c_in_p = x_all_p.shape[1]
    # Gather the flow0 node rows straight into a lane/sublane-padded slab.
    xp = jnp.zeros((p_src, c_in_p), jnp.float32).at[:n_src0].set(x_all_p[n_id0])
    # Exact 0/1 counts at padded shape (mean scaling happens in-kernel in f32).
    a0p = build_adj_counts(ei0, p_mid, p_src)
    a1p = build_adj_counts(ei1, p_dst, p_mid)
    out = _fused_sagenet(a0p, xp, w1p, b1p, a1p, w2p, b2p)
    return out[:n_dst1, :n_classes]


def sagenet_forward(x_all_padded, data_flow, padded_params):
    flow0, flow1 = data_flow
    n_src0, n_dst0 = flow0["size"]
    _, n_dst1 = flow1["size"]
    return _sagenet_impl(
        x_all_padded, flow0["n_id"], flow0["edge_index"], flow1["edge_index"],
        padded_params["W1p"], padded_params["b1p"],
        padded_params["W2p"], padded_params["b2p"],
        n_src0=n_src0, n_dst0=n_dst0, n_dst1=n_dst1,
        n_classes=padded_params["n_classes"])


# ----------------------------------------------------------------------------
# Deterministic setup + run
# ----------------------------------------------------------------------------
if __name__ == "__main__":
    in_channels = 16
    hidden = 32
    out_channels = 8

    n_all = 64        # total nodes in the graph
    n_src0 = 32       # nodes gathered by flow0.n_id (layer-0 sources)
    n_dst0 = 16       # layer-0 targets == layer-1 sources
    n_dst1 = 8        # layer-1 targets (final output rows)
    n_edges0 = 64
    n_edges1 = 32

    key = jax.random.PRNGKey(0)
    keys = jax.random.split(key, 8)

    # node features
    x_all = jax.random.normal(keys[0], (n_all, in_channels), jnp.float32)

    # parameters (torch-like uniform init, deterministic)
    def lin_init(k, fan_in, fan_out):
        kw, kb = jax.random.split(k)
        bound = 1.0 / jnp.sqrt(fan_in)
        W = jax.random.uniform(kw, (fan_in, fan_out), jnp.float32, -bound, bound)
        b = jax.random.uniform(kb, (fan_out,), jnp.float32, -bound, bound)
        return W, b

    W1, b1 = lin_init(keys[1], in_channels, hidden)
    W2, b2 = lin_init(keys[2], hidden, out_channels)
    params = {"W1": W1, "b1": b1, "W2": W2, "b2": b2}

    # One-time (init-path) padding of parameters and feature channels.
    padded_params = prepare_params(params, in_channels, hidden, out_channels)
    x_all_padded = pad_features(x_all, in_channels)

    # synthetic NeighborSampler-style DataFlow
    n_id0 = jax.random.permutation(keys[3], n_all)[:n_src0]
    edge_index0 = jnp.stack([
        jax.random.randint(keys[4], (n_edges0,), 0, n_src0),   # sources in [0, n_src0)
        jax.random.randint(keys[5], (n_edges0,), 0, n_dst0),   # targets in [0, n_dst0)
    ])
    edge_index1 = jnp.stack([
        jax.random.randint(keys[6], (n_edges1,), 0, n_dst0),   # sources in [0, n_dst0)
        jax.random.randint(keys[7], (n_edges1,), 0, n_dst1),   # targets in [0, n_dst1)
    ])
    data_flow = [
        {"n_id": n_id0, "edge_index": edge_index0, "size": (n_src0, n_dst0),
         "res_n_id": jnp.arange(n_dst0)},   # unused (concat=False)
        {"n_id": None, "edge_index": edge_index1, "size": (n_dst0, n_dst1),
         "res_n_id": jnp.arange(n_dst1)},   # unused (concat=False)
    ]

    out = sagenet_forward(x_all_padded, data_flow, padded_params)
    out = jax.block_until_ready(out)
    assert out.shape == (n_dst1, out_channels)
    # rows of log_softmax should exp-sum to ~1
    assert jnp.allclose(jnp.sum(jnp.exp(out), axis=1), 1.0, atol=1e-4)

    # pure-JAX f32 reference
    def ref_mean_adj(edge_index, n_src, n_dst):
        A = jnp.zeros((n_dst, n_src), jnp.float32).at[edge_index[1], edge_index[0]].add(1.0)
        deg = jnp.sum(A, axis=1, keepdims=True)
        return A / jnp.maximum(deg, 1.0)

    x_g = x_all[n_id0]
    A0_r = ref_mean_adj(edge_index0, n_src0, n_dst0)
    A1_r = ref_mean_adj(edge_index1, n_dst0, n_dst1)
    h_r = jnp.maximum(A0_r @ x_g @ W1 + b1, 0.0)
    z_r = A1_r @ h_r @ W2 + b2
    ref = jax.nn.log_softmax(z_r, axis=1)
    assert jnp.allclose(out, ref, atol=2e-2), float(jnp.max(jnp.abs(out - ref)))

    print("KERNEL_OK")
</pallas_src>

<mosaic_0001>
module attributes {stable_mosaic.version = 11 : i64} {
  func.func @_sagenet_kernel(%arg0: memref<128x128xf32, #tpu.memory_space<vmem>>, %arg1: memref<128x128xf32, #tpu.memory_space<vmem>>, %arg2: memref<128x128xf32, #tpu.memory_space<vmem>>, %arg3: memref<1x128xf32, #tpu.memory_space<vmem>>, %arg4: memref<8x128xf32, #tpu.memory_space<vmem>>, %arg5: memref<128x128xf32, #tpu.memory_space<vmem>>, %arg6: memref<1x128xf32, #tpu.memory_space<vmem>>, %arg7: memref<8x128xf32, #tpu.memory_space<vmem>>) attributes {dimension_semantics = [], scalar_prefetch = 0 : i64, scratch_operands = 0 : i64, tpu.core_type = #tpu.core_type<tc>} {
    %c0 = arith.constant 0 : index
    %c0_0 = arith.constant 0 : index
    %0 = vector.load %arg0[%c0, %c0_0] : memref<128x128xf32, #tpu.memory_space<vmem>>, vector<128x128xf32>
    %cst = arith.constant dense<0.000000e+00> : vector<128xf32>
    %1 = vector.multi_reduction <add>, %0, %cst [1] : vector<128x128xf32> to vector<128xf32>
    %2 = vector.shape_cast %1 : vector<128xf32> to vector<128x1xf32>
    %c0_1 = arith.constant 0 : index
    %c0_2 = arith.constant 0 : index
    %3 = vector.load %arg1[%c0_1, %c0_2] : memref<128x128xf32, #tpu.memory_space<vmem>>, vector<128x128xf32>
    %cst_3 = arith.constant dense<0.000000e+00> : vector<128x128xf32>
    %4 = tpu.matmul %0, %3, %cst_3 {dimension_numbers = #tpu.dot_dimension_numbers<[1], [0], [0], [1], [0, 0, 1, 1], [], []>} : vector<128x128xf32>, vector<128x128xf32>, vector<128x128xf32> -> vector<128x128xf32>
    %cst_4 = arith.constant 1.000000e+00 : f32
    %5 = vector.broadcast %cst_4 : f32 to vector<128x1xf32>
    %6 = arith.maximumf %2, %5 : vector<128x1xf32>
    %cst_5 = arith.constant 1.000000e+00 : f32
    %7 = vector.broadcast %cst_5 : f32 to vector<128x1xf32>
    %8 = arith.divf %7, %6 : vector<128x1xf32>
    %9 = vector.broadcast %8 : vector<128x1xf32> to vector<128x128xf32>
    %10 = arith.mulf %4, %9 : vector<128x128xf32>
    %c0_6 = arith.constant 0 : index
    %c0_7 = arith.constant 0 : index
    %11 = vector.load %arg2[%c0_6, %c0_7] : memref<128x128xf32, #tpu.memory_space<vmem>>, vector<128x128xf32>
    %cst_8 = arith.constant dense<0.000000e+00> : vector<128x128xf32>
    %12 = tpu.matmul %10, %11, %cst_8 {dimension_numbers = #tpu.dot_dimension_numbers<[1], [0], [0], [1], [0, 0, 1, 1], [], []>} : vector<128x128xf32>, vector<128x128xf32>, vector<128x128xf32> -> vector<128x128xf32>
    %c0_9 = arith.constant 0 : index
    %c0_10 = arith.constant 0 : index
    %13 = vector.load %arg3[%c0_9, %c0_10] : memref<1x128xf32, #tpu.memory_space<vmem>>, vector<1x128xf32>
    %14 = vector.broadcast %13 : vector<1x128xf32> to vector<128x128xf32>
    %15 = arith.addf %12, %14 : vector<128x128xf32>
    %cst_11 = arith.constant 0.000000e+00 : f32
    %16 = vector.broadcast %cst_11 : f32 to vector<128x128xf32>
    %17 = arith.maximumf %15, %16 : vector<128x128xf32>
    %c0_12 = arith.constant 0 : index
    %c0_13 = arith.constant 0 : index
    %18 = vector.load %arg4[%c0_12, %c0_13] : memref<8x128xf32, #tpu.memory_space<vmem>>, vector<8x128xf32>
    %cst_14 = arith.constant dense<0.000000e+00> : vector<8xf32>
    %19 = vector.multi_reduction <add>, %18, %cst_14 [1] : vector<8x128xf32> to vector<8xf32>
    %20 = vector.shape_cast %19 : vector<8xf32> to vector<8x1xf32>
    %cst_15 = arith.constant dense<0.000000e+00> : vector<8x128xf32>
    %21 = tpu.matmul %18, %17, %cst_15 {dimension_numbers = #tpu.dot_dimension_numbers<[1], [0], [0], [1], [0, 0, 1, 1], [], []>} : vector<8x128xf32>, vector<128x128xf32>, vector<8x128xf32> -> vector<8x128xf32>
    %cst_16 = arith.constant 1.000000e+00 : f32
    %22 = vector.broadcast %cst_16 : f32 to vector<8x1xf32>
    %23 = arith.maximumf %20, %22 : vector<8x1xf32>
    %cst_17 = arith.constant 1.000000e+00 : f32
    %24 = vector.broadcast %cst_17 : f32 to vector<8x1xf32>
    %25 = arith.divf %24, %23 : vector<8x1xf32>
    %26 = vector.broadcast %25 : vector<8x1xf32> to vector<8x128xf32>
    %27 = arith.mulf %21, %26 : vector<8x128xf32>
    %c0_18 = arith.constant 0 : index
    %c0_19 = arith.constant 0 : index
    %28 = vector.load %arg5[%c0_18, %c0_19] : memref<128x128xf32, #tpu.memory_space<vmem>>, vector<128x128xf32>
    %cst_20 = arith.constant dense<0.000000e+00> : vector<8x128xf32>
    %29 = tpu.matmul %27, %28, %cst_20 {dimension_numbers = #tpu.dot_dimension_numbers<[1], [0], [0], [1], [0, 0, 1, 1], [], []>} : vector<8x128xf32>, vector<128x128xf32>, vector<8x128xf32> -> vector<8x128xf32>
    %c0_21 = arith.constant 0 : index
    %c0_22 = arith.constant 0 : index
    %30 = vector.load %arg6[%c0_21, %c0_22] : memref<1x128xf32, #tpu.memory_space<vmem>>, vector<1x128xf32>
    %31 = vector.broadcast %30 : vector<1x128xf32> to vector<8x128xf32>
    %32 = arith.addf %29, %31 : vector<8x128xf32>
    %cst_23 = arith.constant dense<0xFF800000> : vector<8xf32>
    %33 = vector.multi_reduction <maximumf>, %32, %cst_23 [1] : vector<8x128xf32> to vector<8xf32>
    %34 = vector.shape_cast %33 : vector<8xf32> to vector<8x1xf32>
    %35 = vector.broadcast %34 : vector<8x1xf32> to vector<8x128xf32>
    %36 = arith.subf %32, %35 : vector<8x128xf32>
    %37 = math.exp %36 : vector<8x128xf32>
    %cst_24 = arith.constant dense<0.000000e+00> : vector<8xf32>
    %38 = vector.multi_reduction <add>, %37, %cst_24 [1] : vector<8x128xf32> to vector<8xf32>
    %39 = vector.shape_cast %38 : vector<8xf32> to vector<8x1xf32>
    %40 = math.log %39 : vector<8x1xf32>
    %41 = arith.addf %40, %34 : vector<8x1xf32>
    %42 = vector.broadcast %41 : vector<8x1xf32> to vector<8x128xf32>
    %43 = arith.subf %32, %42 : vector<8x128xf32>
    %c0_25 = arith.constant 0 : index
    %c0_26 = arith.constant 0 : index
    %44 = vector.load %arg7[%c0_25, %c0_26] : memref<8x128xf32, #tpu.memory_space<vmem>>, vector<8x128xf32>
    tpu.vector_store %arg7[%c0_25, %c0_26], %43 {strides = array<i32>} : memref<8x128xf32, #tpu.memory_space<vmem>>, vector<8x128xf32>,
    return
  }
}

</mosaic_0001>

<bundles_post_ra>
// kernel: _sagenet_impl.1
= control target key start
LH: loop header
LB: loop body
LE: loop exit
PB: predicated region body
PF: predicated region fallthrough
CT: control target
= control target key end

     0   :  { %s1368_s0 = inlined_call_operand.vmem [shape: f32[128,128], index: 0, kind: input, shape index: {}]   ;;  %s1369_s1 = inlined_call_operand.vmem [shape: f32[128,128], index: 1, kind: input, shape index: {}]   ;;  %s1370_s2 = inlined_call_operand.vmem [shape: f32[128,128], index: 2, kind: input, shape index: {}]   ;;  %s1371_s3 = inlined_call_operand.vmem [shape: f32[1,128], index: 3, kind: input, shape index: {}]   ;;  %s1372_s4 = inlined_call_operand.vmem [shape: f32[8,128], index: 4, kind: input, shape index: {}]   ;;  %s1373_s5 = inlined_call_operand.vmem [shape: f32[128,128], index: 5, kind: input, shape index: {}]   ;;  %s1374_s6 = inlined_call_operand.vmem [shape: f32[1,128], index: 6, kind: input, shape index: {}]   ;;  %s1375_s7 = inlined_call_operand.hbm [shape: f32[8,128], index: 7, kind: output, shape index: {}]  }
   0x1   :  { %v90_v0 = vld [vmem:[%s1369_s1 + $0x78] sm:$0xff]  ;;  %v89_v1 = vld [vmem:[%s1369_s1 + $0x70] sm:$0xff]  ;;  %v88_v2 = vld [vmem:[%s1369_s1 + $0x68] sm:$0xff] }
   0x2   :  { %637 = vmatpush.msra.mxu2 %v90_v0  ;;  %91 = vmatpush.msra.mxu0 %v90_v0  ;;  %v789_v3 = vld [vmem:[%s1368_s0 + $0x48] sm:$0xff]  ;;  %v87_v4 = vld [vmem:[%s1369_s1 + $0x60] sm:$0xff]  ;;  %v798_v5 = vld [vmem:[%s1368_s0 + $0x50] sm:$0xff] }
   0x3   :  { %61 = vadd.xlane.f32.xlu0 %v789_v3  ;;  %v86_v6 = vld [vmem:[%s1369_s1 + $0x58] sm:$0xff]  ;;  %63 = vadd.xlane.f32.xlu1 %v798_v5  ;;  %v85_v8 = vld [vmem:[%s1369_s1 + $0x50] sm:$0xff] }
   0x4   :  { %638 = vmatpush.msra.mxu2 %v89_v1  ;;  %92 = vmatpush.msra.mxu0 %v89_v1  ;;  %v807_v7 = vld [vmem:[%s1368_s0 + $0x58] sm:$0xff] }
   0x5   :  { %65 = vadd.xlane.f32.xlu2 %v807_v7 }
   0x6   :  { %639 = vmatpush.msra.mxu2 %v88_v2  ;;  %93 = vmatpush.msra.mxu0 %v88_v2 }
   0x8   :  { %640 = vmatpush.msra.mxu2 %v87_v4  ;;  %94 = vmatpush.msra.mxu0 %v87_v4 }
   0x9   :  { %12 = vsyncpa [#allocation3], 0  ;;  %v27_v9 = vld [vmem:[%s1368_s0] sm:$0xff]  ;;  %v84_v10 = vld [vmem:[%s1369_s1 + $0x48] sm:$0xff]  ;;  %s628_s11 = sshll.u32 %s1375_s7, 4  ;;  %s629_s11 = int_to_ptr.hbm [resolvable:$true] %s628_s11 }
   0xa   :  { %641 = vmatpush.msra.mxu2 %v86_v6  ;;  %95 = vmatpush.msra.mxu0 %v86_v6  ;;  %v28_v11 = vld [vmem:[%s1368_s0 + $0x8] sm:$0xff]  ;;  %v83_v12 = vld [vmem:[%s1369_s1 + $0x40] sm:$0xff]  ;;  %v29_v13 = vld [vmem:[%s1368_s0 + $0x10] sm:$0xff] }
   0xb   :  { %43 = vadd.xlane.f32.xlu0 %v27_v9  ;;  %v82_v14 = vld [vmem:[%s1369_s1 + $0x38] sm:$0xff]  ;;  %45 = vadd.xlane.f32.xlu1 %v28_v11  ;;  %v81_v15 = vld [vmem:[%s1369_s1 + $0x30] sm:$0xff]  ;;  %v39_v16 = vld [vmem:[%s1368_s0 + $0x60] sm:$0xff] }
   0xc   :  { %642 = vmatpush.msra.mxu2 %v85_v8  ;;  %96 = vmatpush.msra.mxu0 %v85_v8  ;;  %v80_v17 = vld [vmem:[%s1369_s1 + $0x28] sm:$0xff]  ;;  %v30_v18 = vld [vmem:[%s1368_s0 + $0x18] sm:$0xff]  ;;  %v79_v19 = vld [vmem:[%s1369_s1 + $0x20] sm:$0xff] }
   0xd   :  { %47 = vadd.xlane.f32.xlu2 %v29_v13  ;;  %v40_v20 = vld [vmem:[%s1368_s0 + $0x68] sm:$0xff]  ;;  %v78_v21 = vld [vmem:[%s1369_s1 + $0x18] sm:$0xff]  ;;  %v77_v22 = vld [vmem:[%s1369_s1 + $0x10] sm:$0xff] }
   0xe   :  { %643 = vmatpush.msra.mxu2 %v84_v10  ;;  %97 = vmatpush.msra.mxu0 %v84_v10  ;;  %v31_v23 = vld [vmem:[%s1368_s0 + $0x20] sm:$0xff]  ;;  %v76_v24 = vld [vmem:[%s1369_s1 + $0x8] sm:$0xff]  ;;  %v41_v25 = vld [vmem:[%s1368_s0 + $0x70] sm:$0xff] }
   0xf   :  { %v75_v26 = vld [vmem:[%s1369_s1] sm:$0xff]  ;;  %v32_v27 = vld [vmem:[%s1368_s0 + $0x28] sm:$0xff]  ;;  %v42_v28 = vld [vmem:[%s1368_s0 + $0x78] sm:$0xff] }
  0x10   :  { %644 = vmatpush.msra.mxu2 %v83_v12  ;;  %98 = vmatpush.msra.mxu0 %v83_v12  ;;  %v33_v29 = vld [vmem:[%s1368_s0 + $0x30] sm:$0xff]  ;;  %v34_v30 = vld [vmem:[%s1368_s0 + $0x38] sm:$0xff]  ;;  %v35_v31 = vld [vmem:[%s1368_s0 + $0x40] sm:$0xff] }
  0x11   :  { %v443_v32 = vld [vmem:[%s1370_s2 + $0x78] sm:$0xff]  ;;  %v442_v33 = vld [vmem:[%s1370_s2 + $0x70] sm:$0xff]  ;;  %v441_v34 = vld [vmem:[%s1370_s2 + $0x68] sm:$0xff] }
  0x12   :  { %645 = vmatpush.msra.mxu2 %v82_v14  ;;  %99 = vmatpush.msra.mxu0 %v82_v14  ;;  %v440_v35 = vld [vmem:[%s1370_s2 + $0x60] sm:$0xff]  ;;  %v439_v36 = vld [vmem:[%s1370_s2 + $0x58] sm:$0xff]  ;;  %v438_v37 = vld [vmem:[%s1370_s2 + $0x50] sm:$0xff] }
  0x13   :  { %67 = vadd.xlane.f32.xlu0 %v39_v16  ;;  %49 = vadd.xlane.f32.xlu1 %v30_v18  ;;  %v437_v38 = vld [vmem:[%s1370_s2 + $0x48] sm:$0xff]  ;;  %v436_v39 = vld [vmem:[%s1370_s2 + $0x40] sm:$0xff]  ;;  %v435_v40 = vld [vmem:[%s1370_s2 + $0x38] sm:$0xff] }
  0x14   :  { %646 = vmatpush.msra.mxu2 %v81_v15  ;;  %100 = vmatpush.msra.mxu0 %v81_v15  ;;  %v434_v41 = vld [vmem:[%s1370_s2 + $0x30] sm:$0xff]  ;;  %v433_v42 = vld [vmem:[%s1370_s2 + $0x28] sm:$0xff]  ;;  %v432_v43 = vld [vmem:[%s1370_s2 + $0x20] sm:$0xff] }
  0x15   :  { %69 = vadd.xlane.f32.xlu2 %v40_v20  ;;  %448 = vmatpush.msra.mxu1 %v443_v32  ;;  %v431_v44 = vld [vmem:[%s1370_s2 + $0x18] sm:$0xff]  ;;  %v430_v45 = vld [vmem:[%s1370_s2 + $0x10] sm:$0xff]  ;;  %v429_v48 = vld [vmem:[%s1370_s2 + $0x8] sm:$0xff] }
  0x16   :  { %647 = vmatpush.msra.mxu2 %v80_v17  ;;  %101 = vmatpush.msra.mxu0 %v80_v17  ;;  %v428_v49 = vld [vmem:[%s1370_s2] sm:$0xff] }
  0x17   :  { %653 = vmatpush.msra.mxu3 %v443_v32  ;;  %449 = vmatpush.msra.mxu1 %v442_v33 }
  0x18   :  { %648 = vmatpush.msra.mxu2 %v79_v19  ;;  %102 = vmatpush.msra.mxu0 %v79_v19 }
  0x19   :  { %654 = vmatpush.msra.mxu3 %v442_v33  ;;  %450 = vmatpush.msra.mxu1 %v441_v34 }
  0x1a   :  { %649 = vmatpush.msra.mxu2 %v78_v21  ;;  %103 = vmatpush.msra.mxu0 %v78_v21 }
  0x1b   :  { %51 = vadd.xlane.f32.xlu0 %v31_v23  ;;  %71 = vadd.xlane.f32.xlu1 %v41_v25 }
  0x1c   :  { %650 = vmatpush.msra.mxu2 %v77_v22  ;;  %104 = vmatpush.msra.mxu0 %v77_v22 }
  0x1d   :  { %53 = vadd.xlane.f32.xlu2 %v32_v27  ;;  %655 = vmatpush.msra.mxu3 %v441_v34 }
  0x1e   :  { %651 = vmatpush.msra.mxu2 %v76_v24  ;;  %105 = vmatpush.msra.mxu0 %v76_v24 }
  0x1f   :  { %451 = vmatpush.msra.mxu1 %v440_v35  ;;  %656 = vmatpush.msra.mxu3 %v440_v35 }
  0x20   :  { %652 = vmatpush.msra.mxu2 %v75_v26  ;;  %106 = vmatpush.msra.mxu0 %v75_v26 }
  0x21   :  { %134 = vmatmul.f32.vlgmr.msra.gmra.mxu2 %v789_v3  ;;  %107 = vmatmul.f32.vlgmr.msra.gmra.mxu0 %v27_v9 }
  0x22   :  { %452 = vmatpush.msra.mxu1 %v439_v36  ;;  %657 = vmatpush.msra.mxu3 %v439_v36 }
  0x23   :  { %73 = vadd.xlane.f32.xlu0 %v42_v28  ;;  %55 = vadd.xlane.f32.xlu1 %v33_v29 }
  0x24   :  { %453 = vmatpush.msra.mxu1 %v438_v37  ;;  %658 = vmatpush.msra.mxu3 %v438_v37 }
  0x25   :  { %57 = vadd.xlane.f32.xlu2 %v34_v30 }
  0x26   :  { %454 = vmatpush.msra.mxu1 %v437_v38  ;;  %659 = vmatpush.msra.mxu3 %v437_v38 }
  0x28   :  { %455 = vmatpush.msra.mxu1 %v436_v39  ;;  %660 = vmatpush.msra.mxu3 %v436_v39 }
  0x29   :  { %137 = vmatmul.f32.gmra.mxu2 %v798_v5  ;;  %110 = vmatmul.f32.gmra.mxu0 %v28_v11 }
  0x2a   :  { %456 = vmatpush.msra.mxu1 %v435_v40  ;;  %661 = vmatpush.msra.mxu3 %v435_v40 }
  0x2b   :  { %59 = vadd.xlane.f32.xlu0 %v35_v31 }
  0x2c   :  { %457 = vmatpush.msra.mxu1 %v434_v41  ;;  %662 = vmatpush.msra.mxu3 %v434_v41 }
  0x2e   :  { %458 = vmatpush.msra.mxu1 %v433_v42  ;;  %663 = vmatpush.msra.mxu3 %v433_v42 }
  0x30   :  { %459 = vmatpush.msra.mxu1 %v432_v43  ;;  %664 = vmatpush.msra.mxu3 %v432_v43 }
  0x31   :  { %140 = vmatmul.f32.gmra.mxu2 %v807_v7  ;;  %113 = vmatmul.f32.gmra.mxu0 %v29_v13 }
  0x32   :  { %460 = vmatpush.msra.mxu1 %v431_v44  ;;  %665 = vmatpush.msra.mxu3 %v431_v44 }
  0x34   :  { %461 = vmatpush.msra.mxu1 %v430_v45  ;;  %666 = vmatpush.msra.mxu3 %v430_v45 }
  0x36   :  { %462 = vmatpush.msra.mxu1 %v429_v48  ;;  %667 = vmatpush.msra.mxu3 %v429_v48 }
  0x38   :  { %463 = vmatpush.msra.mxu1 %v428_v49  ;;  %668 = vmatpush.msra.mxu3 %v428_v49 }
  0x39   :  { %143 = vmatmul.f32.gmra.mxu2 %v39_v16  ;;  %116 = vmatmul.f32.gmra.mxu0 %v30_v18 }
  0x41   :  { %146 = vmatmul.f32.gmra.mxu2 %v40_v20  ;;  %119 = vmatmul.f32.gmra.mxu0 %v31_v23 }
  0x49   :  { %149 = vmatmul.f32.gmra.mxu2 %v41_v25  ;;  %122 = vmatmul.f32.gmra.mxu0 %v32_v27 }
  0x51   :  { %152 = vmatmul.f32.gmra.mxu2 %v42_v28  ;;  %125 = vmatmul.f32.gmra.mxu0 %v33_v29 }
  0x59   :  { %128 = vmatmul.f32.gmra.mxu0 %v34_v30 }
  0x61   :  { %131 = vmatmul.f32.gmra.mxu0 %v35_v31 }
  0x76   :  { %v62_v46 = vpop.xlane.xlu0 %61  ;;  %v64_v47 = vpop.xlane.xlu1 %63 }
  0x77   :  { %v933_v54 = vmax.f32 %v62_v46, 1.0  ;;  %v939_v59 = vmax.f32 %v64_v47, 1.0 }
  0x78   :  { %v66_v52 = vpop.xlane.xlu2 %65 }
  0x79   :  { %v948_v0 = vmax.f32 %v66_v52, 1.0  ;;  %vm312_vm3 = vweird.f32 %v933_v54  ;;  %v316_v25 = vand.u32 2147483647, %v933_v54  ;;  %v318_v26 = vand.u32 2147483648, %v933_v54 }
  0x7a   :  { %vm327_vm11 = vweird.f32 %v939_v59  ;;  %v331_v45 = vand.u32 2147483647, %v939_v59  ;;  %v333_v46 = vand.u32 2147483648, %v939_v59 }
  0x7b   :  { %vm1004_vm9 = vcmp.eq.f32.partialorder %v316_v25, 8.507059e+37  ;;  %v319_v41 = vor.u32 1.1754944e-38, %v318_v26 }
  0x7e   :  { %v44_v50 = vpop.xlane.xlu0 %43  ;;  %v46_v53 = vpop.xlane.xlu1 %45 }
  0x7f   :  { %v156_v51 = vmax.f32 %v44_v50, 1.0  ;;  %v935_v55 = vmax.f32 %v46_v53, 1.0 }
  0x80   :  { %v48_v57 = vpop.xlane.xlu2 %47 }
  0x81   :  { %672 = vrcp.f32 %v156_v51  ;;  %v943_v61 = vmax.f32 %v48_v57, 1.0  ;;  %vm177_vm0 = vweird.f32 %v156_v51  ;;  %v183_v8 = vand.u32 2147483648, %v156_v51 }
  0x82   :  { %674 = vrcp.f32 %v933_v54  ;;  %v181_v11 = vand.u32 2147483647, %v156_v51  ;;  %vm192_vm6 = vweird.f32 %v935_v55  ;;  %v198_v32 = vand.u32 2147483648, %v935_v55 }
  0x83   :  { %676 = vrcp.f32 %v935_v55  ;;  %v184_v17 = vor.u32 1.1754944e-38, %v183_v8  ;;  %v196_v37 = vand.u32 2147483647, %v935_v55  ;;  %vm207_vm14 = vweird.f32 %v943_v61 }
  0x84   :  { %678 = vrcp.f32 %v939_v59  ;;  %vm182_vm5 = vcmp.eq.f32.partialorder %v181_v11, 8.507059e+37  ;;  %v199_v47 = vor.u32 1.1754944e-38, %v198_v32  ;;  %v334_v11 = vor.u32 1.1754944e-38, %v333_v46 }
  0x85   :  { %680 = vrcp.f32 %v943_v61  ;;  %vm1028_vm13 = vcmp.eq.f32.partialorder %v196_v37, 8.507059e+37 }
  0x86   :  { %v68_v2 = vpop.xlane.xlu0 %67  ;;  %v50_v4 = vpop.xlane.xlu1 %49  ;;  %682 = vrcp.f32 %v948_v0 }
  0x87   :  { %v673_v56 = vpop.eup %672  ;;  %v958_v9 = vmax.f32 %v50_v4, 1.0  ;;  %v979_v24 = vmax.f32 %v68_v2, 1.0 }
  0x88   :  { %v173_v58 = vmul.f32 %v673_v56, %v156_v51  ;;  %v941_v60 = vpop.eup %674  ;;  %vm178_vm1 = vweird.f32 %v673_v56  ;;  %v70_v20 = vpop.xlane.xlu2 %69 }
  0x89   :  { %v945_v63 = vpop.eup %676  ;;  %v308_v1 = vmul.f32 %v941_v60, %v933_v54  ;;  %vm962_vm2 = vmor %vm177_vm0, %vm178_vm1  ;;  %vm313_vm4 = vweird.f32 %v941_v60  ;;  %684 = vrcp.f32 %v958_v9  ;;  %v1037_v57 = vmax.f32 %v70_v20, 1.0 }
  0x8a   :  { %v174_v62 = vsub.f32 1.0, %v173_v58  ;;  %v188_v5 = vmul.f32 %v945_v63, %v935_v55  ;;  %v956_v7 = vpop.eup %678  ;;  %vm193_vm7 = vweird.f32 %v945_v63  ;;  %vm990_vm8 = vmor %vm312_vm3, %vm313_vm4  ;;  %686 = vrcp.f32 %v979_v24 }
  0x8b   :  { %v309_v6 = vsub.f32 1.0, %v308_v1  ;;  %v960_v13 = vpop.eup %680  ;;  %v323_v16 = vmul.f32 %v956_v7, %v939_v59  ;;  %vm1012_vm10 = vmor %vm192_vm6, %vm193_vm7  ;;  %vm328_vm12 = vweird.f32 %v956_v7  ;;  %v213_v58 = vand.u32 2147483648, %v943_v61 }
  0x8c   :  { %v175_v3 = vmul.f32 %v673_v56, %v174_v62  ;;  %v189_v12 = vsub.f32 1.0, %v188_v5  ;;  %v972_v18 = vpop.eup %682  ;;  %v203_v23 = vmul.f32 %v960_v13, %v943_v61  ;;  %vm208_vm15 = vweird.f32 %v960_v13  ;;  %vm1052_vm0 = vmor %vm327_vm11, %vm328_vm12 }
  0x8d   :  { %v310_v15 = vmul.f32 %v941_v60, %v309_v6  ;;  %v324_v28 = vsub.f32 1.0, %v323_v16  ;;  %v338_v34 = vmul.f32 %v972_v18, %v948_v0  ;;  %v211_v5 = vand.u32 2147483647, %v943_v61  ;;  %vm1068_vm1 = vmor %vm207_vm14, %vm208_vm15 }
  0x8e   :  { %v176_v10 = vadd.f32 %v673_v56, %v175_v3  ;;  %v190_v21 = vmul.f32 %v945_v63, %v189_v12  ;;  %v52_v22 = vpop.xlane.xlu0 %51  ;;  %v204_v38 = vsub.f32 1.0, %v203_v23  ;;  %v72_v51 = vpop.xlane.xlu1 %71  ;;  %vm343_vm3 = vweird.f32 %v972_v18 }
  0x8f   :  { %v311_v27 = vadd.f32 %v941_v60, %v310_v15  ;;  %v995_v33 = vmax.f32 %v52_v22, 1.0  ;;  %v1001_v39 = vpop.eup %684  ;;  %v325_v44 = vmul.f32 %v956_v7, %v324_v28  ;;  %v339_v48 = vsub.f32 1.0, %v338_v34 }
  0x90   :  { %v180_v19 = vsel %vm962_vm2, %v673_v56, %v176_v10  ;;  %v191_v36 = vadd.f32 %v945_v63, %v190_v21  ;;  %v205_v52 = vmul.f32 %v960_v13, %v204_v38  ;;  %v218_v53 = vmul.f32 %v1001_v39, %v958_v9  ;;  %v54_v54 = vpop.xlane.xlu2 %53  ;;  %v1044_v1 = vpop.eup %686 }
  0x91   :  { %v185_v30 = vsel %vm182_vm5, %v184_v17, %v180_v19  ;;  %v315_v43 = vsel %vm990_vm8, %v941_v60, %v311_v27  ;;  %688 = vrcp.f32 %v995_v33  ;;  %v348_v60 = vand.u32 2147483648, %v948_v0 }
  0x92   :  { %v195_v49 = vsel %vm1012_vm10, %v945_v63, %v191_v36  ;;  %v320_v56 = vsel %vm1004_vm9, %v319_v41, %v315_v43  ;;  %v326_v63 = vadd.f32 %v956_v7, %v325_v44  ;;  %v340_v6 = vmul.f32 %v972_v18, %v339_v48 }
  0x93   :  { %v200_v3 = vsel %vm1028_vm13, %v199_v47, %v195_v49  ;;  %v1058_v8 = vmax.f32 %v54_v54, 1.0  ;;  %v206_v12 = vadd.f32 %v960_v13, %v205_v52  ;;  %v219_v14 = vsub.f32 1.0, %v218_v53 }
  0x94   :  { %690 = vrcp.f32 %v1037_v57  ;;  %vm342_vm2 = vweird.f32 %v948_v0  ;;  %v346_v16 = vand.u32 2147483647, %v948_v0  ;;  %v330_v17 = vsel %vm1052_vm0, %v956_v7, %v326_v63 }
  0x95   :  { %vm332_vm4 = vcmp.eq.f32.partialorder %v331_v45, 8.507059e+37  ;;  %v353_v19 = vmul.f32 %v1044_v1, %v979_v24  ;;  %vm1080_vm5 = vcmp.eq.f32.partialorder %v211_v5, 8.507059e+37  ;;  %v214_v20 = vor.u32 1.1754944e-38, %v213_v58  ;;  %vm1091_vm6 = vmor %vm342_vm2, %vm343_vm3 }
  0x96   :  { %v341_v21 = vadd.f32 %v972_v18, %v340_v6  ;;  %692 = vrcp.f32 %v1058_v8  ;;  %v1086_v22 = vmax.f32 %v72_v51, 1.0  ;;  %v210_v0 = vsel %vm1068_vm1, %v960_v13, %v206_v12  ;;  %v56_v26 = vpop.xlane.xlu1 %55 }
  0x97   :  { %v1061_v15 = vpop.eup %688  ;;  %v220_v23 = vmul.f32 %v1001_v39, %v219_v14  ;;  %v335_v28 = vsel %vm332_vm4, %v334_v11, %v330_v17  ;;  %vm1098_vm7 = vcmp.eq.f32.partialorder %v346_v16, 8.507059e+37  ;;  %vm222_vm8 = vweird.f32 %v958_v9 }
  0x98   :  { %v233_v25 = vmul.f32 %v1061_v15, %v995_v33  ;;  %vm223_vm9 = vweird.f32 %v1001_v39  ;;  %v226_v31 = vand.u32 2147483647, %v958_v9  ;;  %v354_v32 = vsub.f32 1.0, %v353_v19  ;;  %v58_v52 = vpop.xlane.xlu2 %57 }
  0x99   :  { %v215_v36 = vsel %vm1080_vm5, %v214_v20, %v210_v0  ;;  %v345_v37 = vsel %vm1091_vm6, %v972_v18, %v341_v21  ;;  %v228_v38 = vand.u32 2147483648, %v958_v9  ;;  %v1113_v40 = vmax.f32 %v56_v26, 1.0  ;;  %vm1123_vm10 = vmor %vm222_vm8, %vm223_vm9  ;;  %v74_v18 = vpop.xlane.xlu0 %73 }
  0x9a   :  { %v1105_v34 = vpop.eup %690  ;;  %694 = vrcp.f32 %v1086_v22  ;;  %v221_v42 = vadd.f32 %v1001_v39, %v220_v23  ;;  %v234_v43 = vsub.f32 1.0, %v233_v25  ;;  %v355_v46 = vmul.f32 %v1044_v1, %v354_v32 }
  0x9b   :  { %vm357_vm11 = vweird.f32 %v979_v24  ;;  %v368_v47 = vmul.f32 %v1105_v34, %v1037_v57  ;;  %vm1133_vm12 = vcmp.eq.f32.partialorder %v226_v31, 8.507059e+37  ;;  %v229_v9 = vor.u32 1.1754944e-38, %v228_v38 }
  0x9c   :  { %v1117_v44 = vpop.eup %692  ;;  %696 = vrcp.f32 %v1113_v40  ;;  %v225_v50 = vsel %vm1123_vm10, %v1001_v39, %v221_v42  ;;  %vm358_vm13 = vweird.f32 %v1044_v1  ;;  %v235_v51 = vmul.f32 %v1061_v15, %v234_v43 }
  0x9d   :  { %v248_v53 = vmul.f32 %v1117_v44, %v1058_v8  ;;  %v363_v58 = vand.u32 2147483648, %v979_v24  ;;  %vm237_vm14 = vweird.f32 %v995_v33  ;;  %vm238_vm15 = vweird.f32 %v1061_v15  ;;  %vm1160_vm0 = vmor %vm357_vm11, %vm358_vm13 }
  0x9e   :  { %v108_v29 = vpop.f32.mrf.mxu0  ;;  %v369_v63 = vsub.f32 1.0, %v368_v47  ;;  %v241_v5 = vand.u32 2147483647, %v995_v33  ;;  %v243_v6 = vand.u32 2147483648, %v995_v33  ;;  %v236_v12 = vadd.f32 %v1061_v15, %v235_v51  ;;  %vm1176_vm1 = vmor %vm237_vm14, %vm238_vm15 }
  0x9f   :  { %v412_v35 = vmul.f32 %v185_v30, %v108_v29  ;;  %v349_v30 = vor.u32 1.1754944e-38, %v348_v60  ;;  %v249_v14 = vsub.f32 1.0, %v248_v53  ;;  %vm372_vm4 = vweird.f32 %v1037_v57 }
  0xa0   :  { %v1150_v60 = vpop.eup %694  ;;  %v370_v61 = vmul.f32 %v1105_v34, %v369_v63  ;;  %vm1186_vm3 = vcmp.eq.f32.partialorder %v241_v5, 8.507059e+37  ;;  %v244_v33 = vor.u32 1.1754944e-38, %v243_v6  ;;  %v240_v21 = vsel %vm1176_vm1, %v1061_v15, %v236_v12 }
  0xa1   :  { %464 = vmatmul.f32.vlgmr.msra.gmra.mxu1 %v412_v35  ;;  %v350_v48 = vsel %vm1098_vm7, %v349_v30, %v345_v37  ;;  %v383_v17 = vmul.f32 %v1150_v60, %v1086_v22  ;;  %vm373_vm5 = vweird.f32 %v1105_v34  ;;  %v60_v0 = vpop.xlane.xlu0 %59  ;;  %v376_v26 = vand.u32 2147483647, %v1037_v57 }
  0xa2   :  { %v1169_v59 = vpop.eup %696  ;;  %v371_v30 = vadd.f32 %v1105_v34, %v370_v61  ;;  %vm252_vm6 = vweird.f32 %v1058_v8  ;;  %vm253_vm7 = vweird.f32 %v1117_v44  ;;  %v245_v31 = vsel %vm1186_vm3, %v244_v33, %v240_v21  ;;  %vm1212_vm8 = vmor %vm372_vm4, %vm373_vm5 }
  0xa3   :  { %v263_v7 = vmul.f32 %v1169_v59, %v1113_v40  ;;  %vm1228_vm9 = vmor %vm252_vm6, %vm253_vm7  ;;  %vm377_vm10 = vcmp.eq.f32.partialorder %v376_v26, 8.507059e+37  ;;  %vm387_vm11 = vweird.f32 %v1086_v22  ;;  %v393_v53 = vand.u32 2147483648, %v1086_v22 }
  0xa4   :  { %v135_v55 = vpop.f32.mrf.mxu2  ;;  %vm267_vm14 = vweird.f32 %v1113_v40  ;;  %vm268_vm15 = vweird.f32 %v1169_v59 }
  0xa5   :  { %v421_v62 = vmul.f32 %v320_v56, %v135_v55  ;;  %v1145_v55 = vmax.f32 %v74_v18, 1.0  ;;  %v361_v56 = vand.u32 2147483647, %v979_v24  ;;  %v364_v24 = vor.u32 1.1754944e-38, %v363_v58  ;;  %vm1262_vm1 = vmor %vm267_vm14, %vm268_vm15 }
  0xa6   :  { %v111_v2 = vpop.f32.mrf.mxu0  ;;  %v264_v42 = vsub.f32 1.0, %v263_v7  ;;  %v394_v6 = vor.u32 1.1754944e-38, %v393_v53  ;;  %v1305_v53 = vld [vmem:[%s1372_s4] sm:$0xff] }
  0xa7   :  { %v413_v10 = vmul.f32 %v200_v3, %v111_v2  ;;  %491 = vmatmul.f32.vlgmr.msra.gmra.mxu3 %v421_v62  ;;  %v356_v62 = vadd.f32 %v1044_v1, %v355_v46  ;;  %v230_v3 = vsel %vm1133_vm12, %v229_v9, %v225_v50  ;;  %698 = vrcp.f32 %v1145_v55  ;;  %530 = vadd.xlane.f32.xlu1 %v1305_v53 }
  0xa8   :  { %vm362_vm2 = vcmp.eq.f32.partialorder %v361_v56, 8.507059e+37  ;;  %v375_v46 = vsel %vm1212_vm8, %v1105_v34, %v371_v30  ;;  %vm388_vm12 = vweird.f32 %v1150_v60  ;;  %v265_v49 = vmul.f32 %v1169_v59, %v264_v42 }
  0xa9   :  { %467 = vmatmul.f32.gmra.mxu1 %v413_v10  ;;  %v1166_v10 = vmax.f32 %v58_v52, 1.0  ;;  %v360_v19 = vsel %vm1160_vm0, %v1044_v1, %v356_v62  ;;  %v250_v1 = vmul.f32 %v1117_v44, %v249_v14  ;;  %v391_v52 = vand.u32 2147483647, %v1086_v22  ;;  %vm1255_vm0 = vmor %vm387_vm11, %vm388_vm12 }
  0xaa   :  { %v365_v25 = vsel %vm362_vm2, %v364_v24, %v360_v19  ;;  %v273_v62 = vand.u32 2147483648, %v1113_v40  ;;  %vm402_vm3 = vweird.f32 %v1145_v55  ;;  %v406_v19 = vand.u32 2147483647, %v1145_v55 }
  0xab   :  { %700 = vrcp.f32 %v1166_v10  ;;  %v251_v38 = vadd.f32 %v1117_v44, %v250_v1  ;;  %vm392_vm2 = vcmp.eq.f32.partialorder %v391_v52, 8.507059e+37  ;;  %v408_v61 = vand.u32 2147483648, %v1145_v55 }
  0xac   :  { %v138_v27 = vpop.f32.mrf.mxu2  ;;  %vm282_vm6 = vweird.f32 %v1166_v10 }
  0xad   :  { %v422_v13 = vmul.f32 %v335_v28, %v138_v27  ;;  %v378_v27 = vand.u32 2147483648, %v1037_v57  ;;  %v384_v28 = vsub.f32 1.0, %v383_v17  ;;  %v1204_v15 = vpop.eup %698 }
  0xae   :  { %v114_v35 = vpop.f32.mrf.mxu0  ;;  %v398_v47 = vmul.f32 %v1204_v15, %v1145_v55  ;;  %vm403_vm4 = vweird.f32 %v1204_v15 }
  0xaf   :  { %v414_v41 = vmul.f32 %v215_v36, %v114_v35  ;;  %494 = vmatmul.f32.gmra.mxu3 %v422_v13  ;;  %v258_v35 = vand.u32 2147483648, %v1058_v8  ;;  %v1217_v36 = vmax.f32 %v60_v0, 1.0  ;;  %v379_v45 = vor.u32 1.1754944e-38, %v378_v27  ;;  %vm1284_vm8 = vmor %vm402_vm3, %vm403_vm4 }
  0xb0   :  { %v385_v57 = vmul.f32 %v1150_v60, %v384_v28  ;;  %v399_v56 = vsub.f32 1.0, %v398_v47  ;;  %v288_v0 = vand.u32 2147483648, %v1166_v10  ;;  %v409_v27 = vor.u32 1.1754944e-38, %v408_v61 }
  0xb1   :  { %470 = vmatmul.f32.gmra.mxu1 %v414_v41  ;;  %v256_v41 = vand.u32 2147483647, %v1058_v8  ;;  %v1221_v43 = vpop.eup %700  ;;  %702 = vrcp.f32 %v1217_v36  ;;  %v255_v8 = vsel %vm1228_vm9, %v1117_v44, %v251_v38  ;;  %v380_v50 = vsel %vm377_vm10, %v379_v45, %v375_v46  ;;  %v670_v44 = vld [vmem:[%s1371_s3] ss:$0 sm:$0xff]  ;;  %s736_s3 = smov [#allocation2]  }
  0xb2   :  { %v278_v34 = vmul.f32 %v1221_v43, %v1166_v10  ;;  %v386_v51 = vadd.f32 %v1150_v60, %v385_v57  ;;  %v400_v12 = vmul.f32 %v1204_v15, %v399_v56  ;;  %vm283_vm7 = vweird.f32 %v1221_v43  ;;  %s626_s8 = sshll.u32 %s736_s3, 4  ;;  %s627_s8 = int_to_ptr.vmem [resolvable:$true] %s626_s8 }
  0xb3   :  { %vm257_vm13 = vcmp.eq.f32.partialorder %v256_v41, 8.507059e+37  ;;  %vm284_vm9 = vmor %vm282_vm6, %vm283_vm7  ;;  %vm407_vm10 = vcmp.eq.f32.partialorder %v406_v19, 8.507059e+37  ;;  %v289_v28 = vor.u32 1.1754944e-38, %v288_v0  ;;  %vm297_vm12 = vweird.f32 %v1217_v36 }
  0xb4   :  { %v141_v54 = vpop.f32.mrf.mxu2  ;;  %v279_v4 = vsub.f32 1.0, %v278_v34  ;;  %v390_v22 = vsel %vm1255_vm0, %v1150_v60, %v386_v51  ;;  %v401_v33 = vadd.f32 %v1204_v15, %v400_v12  ;;  %v301_v41 = vand.u32 2147483647, %v1217_v36 }
  0xb5   :  { %v423_v39 = vmul.f32 %v350_v48, %v141_v54  ;;  %v259_v48 = vor.u32 1.1754944e-38, %v258_v35  ;;  %v395_v60 = vsel %vm392_vm2, %v394_v6, %v390_v22  ;;  %v582_v22 = vld [vmem:[%s1373_s5 + $0x68] sm:$0xff] }
  0xb6   :  { %v117_v2 = vpop.f32.mrf.mxu0  ;;  %v280_v24 = vmul.f32 %v1221_v43, %v279_v4  ;;  %v405_v55 = vsel %vm1284_vm8, %v1204_v15, %v401_v33  ;;  %vm302_vm15 = vcmp.eq.f32.partialorder %v301_v41, 8.507059e+37  ;;  %v584_v4 = vld [vmem:[%s1373_s5 + $0x78] sm:$0xff] }
  0xb7   :  { %v415_v11 = vmul.f32 %v230_v3, %v117_v2  ;;  %497 = vmatmul.f32.gmra.mxu3 %v423_v39  ;;  %v260_v39 = vsel %vm257_vm13, %v259_v48, %v255_v8  ;;  %v266_v2 = vadd.f32 %v1169_v59, %v265_v49  ;;  %v271_v3 = vand.u32 2147483647, %v1113_v40  ;;  %v703_v5 = vpop.eup %702  ;;  %v576_v41 = vld [vmem:[%s1373_s5 + $0x38] sm:$0xff] }
  0xb8   :  { %v274_v40 = vor.u32 1.1754944e-38, %v273_v62  ;;  %v293_v16 = vmul.f32 %v703_v5, %v1217_v36  ;;  %vm298_vm13 = vweird.f32 %v703_v5  ;;  %589 = vmatpush.msrb.mxu3 %v584_v4 }
  0xb9   :  { %473 = vmatmul.f32.gmra.mxu1 %v415_v11  ;;  %v270_v14 = vsel %vm1262_vm1, %v1169_v59, %v266_v2  ;;  %vm272_vm5 = vcmp.eq.f32.partialorder %v271_v3, 8.507059e+37  ;;  %vm299_vm14 = vmor %vm297_vm12, %vm298_vm13 }
  0xba   :  { %v275_v1 = vsel %vm272_vm5, %v274_v40, %v270_v14  ;;  %v294_v26 = vsub.f32 1.0, %v293_v16  ;;  %v581_v14 = vld [vmem:[%s1373_s5 + $0x60] sm:$0xff] }
  0xbc   :  { %v144_v23 = vpop.f32.mrf.mxu2  ;;  %v295_v30 = vmul.f32 %v703_v5, %v294_v26 }
  0xbd   :  { %v424_v29 = vmul.f32 %v365_v25, %v144_v23  ;;  %v281_v23 = vadd.f32 %v1221_v43, %v280_v24  ;;  %v286_v25 = vand.u32 2147483647, %v1166_v10 }
  0xbe   :  { %v120_v13 = vpop.f32.mrf.mxu0  ;;  %v296_v15 = vadd.f32 %v703_v5, %v295_v30 }
  0xbf   :  { %v416_v37 = vmul.f32 %v245_v31, %v120_v13  ;;  %500 = vmatmul.f32.gmra.mxu3 %v424_v29  ;;  %v285_v29 = vsel %vm284_vm9, %v1221_v43, %v281_v23  ;;  %vm287_vm11 = vcmp.eq.f32.partialorder %v286_v25, 8.507059e+37  ;;  %v410_v31 = vsel %vm407_vm10, %v409_v27, %v405_v55 }
  0xc0   :  { %v290_v35 = vsel %vm287_vm11, %v289_v28, %v285_v29  ;;  %v300_v43 = vsel %vm299_vm14, %v703_v5, %v296_v15  ;;  %v583_v5 = vld [vmem:[%s1373_s5 + $0x70] sm:$0xff]  ;;  %v577_v15 = vld [vmem:[%s1373_s5 + $0x40] sm:$0xff] }
  0xc1   :  { %476 = vmatmul.f32.gmra.mxu1 %v416_v37  ;;  %v303_v37 = vand.u32 2147483648, %v1217_v36  ;;  %590 = vmatpush.msrb.mxu3 %v583_v5 }
  0xc3   :  { %v304_v42 = vor.u32 1.1754944e-38, %v303_v37  ;;  %591 = vmatpush.msrb.mxu3 %v582_v22  ;;  %v579_v37 = vld [vmem:[%s1373_s5 + $0x50] sm:$0xff] }
  0xc4   :  { %v147_v9 = vpop.f32.mrf.mxu2 }
  0xc5   :  { %v425_v54 = vmul.f32 %v380_v50, %v147_v9  ;;  %v305_v57 = vsel %vm302_vm15, %v304_v42, %v300_v43  ;;  %592 = vmatpush.msrb.mxu3 %v581_v14  ;;  %v575_v42 = vld [vmem:[%s1373_s5 + $0x30] sm:$0xff]  ;;  %v574_v43 = vld [vmem:[%s1373_s5 + $0x28] sm:$0xff] }
  0xc6   :  { %v123_v58 = vpop.f32.mrf.mxu0 }
  0xc7   :  { %503 = vmatmul.f32.gmra.mxu3 %v425_v54  ;;  %v417_v63 = vmul.f32 %v260_v39, %v123_v58 }
  0xc9   :  { %479 = vmatmul.f32.gmra.mxu1 %v417_v63 }
  0xcc   :  { %v150_v17 = vpop.f32.mrf.mxu2 }
  0xcd   :  { %v426_v20 = vmul.f32 %v395_v60, %v150_v17  ;;  %v580_v60 = vld [vmem:[%s1373_s5 + $0x58] sm:$0xff] }
  0xce   :  { %v126_v21 = vpop.f32.mrf.mxu0  ;;  %593 = vmatpush.msrb.mxu3 %v580_v60 }
  0xcf   :  { %506 = vmatmul.f32.gmra.mxu3 %v426_v20  ;;  %v418_v7 = vmul.f32 %v275_v1, %v126_v21 }
  0xd0   :  { %594 = vmatpush.msrb.mxu3 %v579_v37 }
  0xd1   :  { %482 = vmatmul.f32.gmra.mxu1 %v418_v7 }
  0xd4   :  { %v153_v13 = vpop.f32.mrf.mxu2 }
  0xd5   :  { %v427_v32 = vmul.f32 %v410_v31, %v153_v13 }
  0xd6   :  { %v129_v10 = vpop.f32.mrf.mxu0 }
  0xd7   :  { %509 = vmatmul.f32.gmra.mxu3 %v427_v32  ;;  %v419_v38 = vmul.f32 %v290_v35, %v129_v10 }
  0xd9   :  { %485 = vmatmul.f32.gmra.mxu1 %v419_v38  ;;  %v578_v38 = vld [vmem:[%s1373_s5 + $0x48] sm:$0xff] }
  0xda   :  { %595 = vmatpush.msrb.mxu3 %v578_v38 }
  0xdc   :  { %596 = vmatpush.msrb.mxu3 %v577_v15 }
  0xde   :  { %v132_v45 = vpop.f32.mrf.mxu0  ;;  %597 = vmatpush.msrb.mxu3 %v576_v41 }
  0xdf   :  { %v420_v18 = vmul.f32 %v305_v57, %v132_v45  ;;  %v573_v45 = vld [vmem:[%s1373_s5 + $0x20] sm:$0xff]  ;;  %v572_v57 = vld [vmem:[%s1373_s5 + $0x18] sm:$0xff] }
  0xe0   :  { %598 = vmatpush.msrb.mxu3 %v575_v42 }
  0xe1   :  { %488 = vmatmul.f32.gmra.mxu1 %v420_v18  ;;  %v571_v18 = vld [vmem:[%s1373_s5 + $0x10] sm:$0xff] }
  0xe2   :  { %599 = vmatpush.msrb.mxu3 %v574_v43 }
  0xe4   :  { %600 = vmatpush.msrb.mxu3 %v573_v45 }
  0xe6   :  { %601 = vmatpush.msrb.mxu3 %v572_v57 }
  0xe8   :  { %602 = vmatpush.msrb.mxu3 %v571_v18 }
 0x11e   :  { %v1298_v46 = vpop.f32.mrf.mxu1 }
 0x11f   :  { %v466_v31 = vadd.f32 %v670_v44, %v1298_v46  ;;  %v531_v46 = vpop.xlane.xlu1 %530 }
 0x121   :  { %v513_v35 = vmax.f32 %v466_v31, 0.0 }
 0x126   :  { %v1300_v47 = vpop.f32.mrf.mxu1 }
 0x127   :  { %v469_v30 = vadd.f32 %v670_v44, %v1300_v47  ;;  %v570_v47 = vld [vmem:[%s1373_s5 + $0x8] sm:$0xff] }
 0x128   :  { %603 = vmatpush.msrb.mxu3 %v570_v47 }
 0x129   :  { %v514_v10 = vmax.f32 %v469_v30, 0.0 }
 0x12a   :  { %v492_v48 = vpop.f32.mrf.mxu3 }
 0x12b   :  { %v493_v19 = vadd.f32 %v670_v44, %v492_v48  ;;  %v552_v48 = vmax.f32 %v531_v46, 1.0 }
 0x12d   :  { %v522_v59 = vmax.f32 %v493_v19, 0.0  ;;  %704 = vrcp.f32 %v552_v48  ;;  %vm558_vm0 = vweird.f32 %v552_v48 }
 0x12e   :  { %v471_v8 = vpop.f32.mrf.mxu1 }
 0x12f   :  { %v472_v28 = vadd.f32 %v670_v44, %v471_v8  ;;  %v569_v8 = vld [vmem:[%s1373_s5] sm:$0xff] }
 0x130   :  { %604 = vmatpush.msrb.mxu3 %v569_v8 }
 0x131   :  { %v515_v32 = vmax.f32 %v472_v28, 0.0 }
 0x132   :  { %v495_v49 = vpop.f32.mrf.mxu3 }
 0x133   :  { %v496_v24 = vadd.f32 %v670_v44, %v495_v49  ;;  %v705_v49 = vpop.eup %704 }
 0x134   :  { %vm559_vm1 = vweird.f32 %v705_v49 }
 0x135   :  { %v523_v20 = vmax.f32 %v496_v24, 0.0  ;;  %vm560_vm2 = vmor %vm558_vm0, %vm559_vm1 }
 0x136   :  { %v474_v34 = vpop.f32.mrf.mxu1 }
 0x137   :  { %v475_v27 = vadd.f32 %v670_v44, %v474_v34  ;;  %v554_v34 = vmul.f32 %v705_v49, %v552_v48 }
 0x139   :  { %v516_v13 = vmax.f32 %v475_v27, 0.0 }
 0x13a   :  { %v498_v9 = vpop.f32.mrf.mxu3 }
 0x13b   :  { %v499_v12 = vadd.f32 %v670_v44, %v498_v9  ;;  %v555_v9 = vsub.f32 1.0, %v554_v34 }
 0x13d   :  { %v524_v61 = vmax.f32 %v499_v12, 0.0 }
 0x13e   :  { %v477_v50 = vpop.f32.mrf.mxu1 }
 0x13f   :  { %v478_v25 = vadd.f32 %v670_v44, %v477_v50  ;;  %v556_v50 = vmul.f32 %v705_v49, %v555_v9 }
 0x141   :  { %v517_v29 = vmax.f32 %v478_v25, 0.0 }
 0x142   :  { %v501_v36 = vpop.f32.mrf.mxu3 }
 0x143   :  { %v502_v6 = vadd.f32 %v670_v44, %v501_v36  ;;  %v564_v36 = vand.u32 2147483648, %v552_v48 }
 0x145   :  { %v525_v16 = vmax.f32 %v502_v6, 0.0 }
 0x146   :  { %v480_v51 = vpop.f32.mrf.mxu1 }
 0x147   :  { %v481_v7 = vadd.f32 %v670_v44, %v480_v51  ;;  %v557_v51 = vadd.f32 %v705_v49, %v556_v50 }
 0x149   :  { %v518_v55 = vmax.f32 %v481_v7, 0.0 }
 0x14a   :  { %v504_v52 = vpop.f32.mrf.mxu3 }
 0x14b   :  { %v505_v2 = vadd.f32 %v670_v44, %v504_v52  ;;  %v562_v52 = vand.u32 2147483647, %v552_v48 }
 0x14d   :  { %v526_v40 = vmax.f32 %v505_v2, 0.0  ;;  %vm563_vm3 = vcmp.eq.f32.partialorder %v562_v52, 8.507059e+37 }
 0x14e   :  { %v483_v54 = vpop.f32.mrf.mxu1 }
 0x14f   :  { %v484_v1 = vadd.f32 %v670_v44, %v483_v54  ;;  %v561_v54 = vsel %vm560_vm2, %v705_v49, %v557_v51 }
 0x151   :  { %v519_v26 = vmax.f32 %v484_v1, 0.0 }
 0x152   :  { %v507_v56 = vpop.f32.mrf.mxu3 }
 0x153   :  { %v508_v62 = vadd.f32 %v670_v44, %v507_v56 }
 0x155   :  { %v527_v11 = vmax.f32 %v508_v62, 0.0 }
 0x156   :  { %v486_v39 = vpop.f32.mrf.mxu1 }
 0x157   :  { %v487_v21 = vadd.f32 %v670_v44, %v486_v39  ;;  %v671_v39 = vld [vmem:[%s1374_s6] ss:$0 sm:$0xff] }
 0x159   :  { %v520_v23 = vmax.f32 %v487_v21, 0.0 }
 0x15a   :  { %v510_v58 = vpop.f32.mrf.mxu3 }
 0x15b   :  { %v511_v63 = vadd.f32 %v670_v44, %v510_v58 }
 0x15d   :  { %v528_v3 = vmax.f32 %v511_v63, 0.0 }
 0x15e   :  { %v489_v17 = vpop.f32.mrf.mxu1 }
 0x15f   :  { %532 = vmatpush.msrb.mxu2 %v528_v3  ;;  %v490_v33 = vadd.f32 %v670_v44, %v489_v17 }
 0x161   :  { %533 = vmatpush.msrb.mxu2 %v527_v11  ;;  %v521_v0 = vmax.f32 %v490_v33, 0.0 }
 0x163   :  { %534 = vmatpush.msrb.mxu2 %v526_v40 }
 0x165   :  { %535 = vmatpush.msrb.mxu2 %v525_v16 }
 0x167   :  { %536 = vmatpush.msrb.mxu2 %v524_v61 }
 0x169   :  { %537 = vmatpush.msrb.mxu2 %v523_v20 }
 0x16b   :  { %538 = vmatpush.msrb.mxu2 %v522_v59 }
 0x16d   :  { %539 = vmatpush.msrb.mxu2 %v521_v0 }
 0x16f   :  { %540 = vmatpush.msrb.mxu2 %v520_v23 }
 0x171   :  { %541 = vmatpush.msrb.mxu2 %v519_v26 }
 0x173   :  { %542 = vmatpush.msrb.mxu2 %v518_v55 }
 0x175   :  { %543 = vmatpush.msrb.mxu2 %v517_v29 }
 0x177   :  { %544 = vmatpush.msrb.mxu2 %v516_v13 }
 0x179   :  { %545 = vmatpush.msrb.mxu2 %v515_v32 }
 0x17b   :  { %546 = vmatpush.msrb.mxu2 %v514_v10 }
 0x17d   :  { %547 = vmatpush.msrb.mxu2 %v513_v35 }
 0x17e   :  { %548 = vmatmul.f32.vlgmr.msrb.gmra.mxu2 %v1305_v53  ;;  %v565_v53 = vor.u32 1.1754944e-38, %v564_v36 }
 0x180   :  { %v566_v44 = vsel %vm563_vm3, %v565_v53, %v561_v54 }
 0x201   :  { %v549_v56 = vpop.f32.mrf.mxu2 }
 0x202   :  { %v568_v58 = vmul.f32 %v566_v44, %v549_v56 }
 0x204   :  { %605 = vmatmul.f32.vlgmr.msrb.gmra.mxu3 %v568_v58 }
 0x287   :  { %v606_v62 = vpop.f32.mrf.mxu3 }
 0x288   :  { %v607_v63 = vadd.f32 %v671_v39, %v606_v62 }
 0x28a   :  { %609 = vmax.xlane.f32.xlu2 %v607_v63 }
 0x2fd   :  { %v610_v2 = vpop.xlane.xlu2 %609 }
 0x2fe   :  { %v611_v3 = vsub.f32 %v607_v63, %v610_v2 }
 0x300   :  { %v612_v4 = vmul.f32 1.442695, %v611_v3 }
 0x302   :  { %706 = vpow2.f32 %v612_v4 }
 0x308   :  { %v707_v5 = vpop.eup %706 }
 0x309   :  { %614 = vadd.xlane.f32.xlu0 %v707_v5 }
 0x37c   :  { %v615_v6 = vpop.xlane.xlu0 %614 }
 0x37d   :  { %708 = vlog2.f32 %v615_v6 }
 0x383   :  { %v709_v11 = vpop.eup %708 }
 0x384   :  { %v617_v22 = vmul.f32 0.6931472, %v709_v11 }
 0x386   :  { %v618_v12 = vadd.f32 %v617_v22, %v610_v2 }
 0x388   :  { %v619_v40 = vsub.f32 %v607_v63, %v618_v12 }
 0x38a   :  { %620 = vst [vmem:[#allocation2] sm:$0xff] %v619_v40 }
 0x38b   :  { %631 = dma.vmem_to_hbm [thread:$0]  %s627_s8, 128, %s629_s11, [#allocation3]  }
 0x38c   :  { %734 = dma.done.wait [#allocation3], 128  }
 0x38d   :  { %735 = vsyncadd [#allocation3], 4294967168 }
 0x38e   :  { %636 = vsyncpa [#allocation3], 1 }

</bundles_post_ra>
